<compile_context>
chip_gen: v7x
topology: tpu7x:2x2x1
jax: 0.10.0
libtpu: 0.0.40
codegen_flags: <defaults>
</compile_context>

<pallas_src>
import jax
import jax.numpy as jnp
from jax.experimental import pallas as pl
from jax.experimental.pallas import tpu as pltpu

LANES = 128


def _log_sqrt_kernel(x_ref, o_ref):
    # Elementwise log followed by sqrt, entirely in VMEM.  Compute pinned to
    # f32 (EUP path, exact on all generations); cast back on store.
    x = x_ref[...].astype(jnp.float32)
    o_ref[...] = jnp.sqrt(jnp.log(x)).astype(o_ref.dtype)


def _pick_generation_params():
    """(block_bytes, vmem_limit_bytes) tuned per TPU generation."""
    try:
        kind = jax.devices()[0].device_kind.lower()
    except Exception:  # pragma: no cover - defensive
        kind = ""
    if "v7" in kind:
        return 8 * 1024 * 1024, 40 << 20  # 4 x 8 MiB buffers well under 64 MiB physical
    if "v6" in kind:
        return 4 * 1024 * 1024, 32 << 20  # 4 x 4 MiB inside the 32 MiB scoped default
    # v5e / v5 lite / unknown: VMEM (16 MiB scoped default) is the risk, not overhead.
    return 2 * 1024 * 1024, None


def dace_module_forward(x: jax.Array) -> jax.Array:
    """Pallas implementation of DaceModule(MyModule()).forward(x): y = sqrt(log(x)).

    Works for any shape; result is NaN where x < 1 (same as the PyTorch module).
    """
    orig_shape = x.shape
    orig_dtype = x.dtype
    itemsize = jnp.dtype(orig_dtype).itemsize
    total = x.size
    if total == 0:
        return x

    block_bytes, vmem_limit = _pick_generation_params()

    # Packed-sublane granularity: 8 rows for 32-bit, 16 for 16-bit, 32 for 8-bit.
    packing = max(1, 4 // itemsize)
    sublane_mult = 8 * packing

    flat = x.reshape(-1)

    # Only pad when the element count is not a multiple of 128 (a lane-aligned
    # reshape would otherwise be impossible).  The pad itself is < 128 elements
    # but jnp.pad copies the whole array; this path is never taken for typical
    # NN tensors whose totals are multiples of 128.
    # TODO(synk): for huge ragged totals, split into an aligned bulk call plus a
    # tiny tail call instead of padding to avoid the extra HBM pass.
    work_total = -(-total // LANES) * LANES
    if work_total != total:
        flat = jnp.pad(flat, (0, work_total - total), constant_values=1)

    # Lane-dense last dim: widest multiple of 128 (capped at 4096) dividing the
    # (possibly padded) total.  Rows need NOT be a multiple of the tile - Pallas
    # masks the partial last block.
    lane_width = LANES
    for c in (4096, 2048, 1024, 512, 256, 128):
        if work_total % c == 0:
            lane_width = c
            break
    rows = work_total // lane_width

    # Rows per block targeting ~block_bytes, rounded to the packed sublane unit.
    max_tile_rows = max(
        sublane_mult,
        (block_bytes // (lane_width * itemsize)) // sublane_mult * sublane_mult,
    )
    # Either a multiple of sublane_mult, or the full row extent (both legal).
    tile_rows = min(rows, max_tile_rows)

    num_blocks = pl.cdiv(rows, tile_rows)
    x2d = flat.reshape(rows, lane_width)

    out2d = pl.pallas_call(
        _log_sqrt_kernel,
        out_shape=jax.ShapeDtypeStruct((rows, lane_width), orig_dtype),
        grid_spec=pl.GridSpec(
            grid=(num_blocks,),
            in_specs=[pl.BlockSpec((tile_rows, lane_width), lambda i: (i, 0))],
            out_specs=pl.BlockSpec((tile_rows, lane_width), lambda i: (i, 0)),
        ),
        compiler_params=pltpu.CompilerParams(
            dimension_semantics=("parallel",),  # megacore sharding on v7x
            vmem_limit_bytes=vmem_limit,
        ),
        cost_estimate=pl.CostEstimate(
            flops=0,
            transcendentals=2 * work_total,           # log + sqrt per element
            bytes_accessed=2 * work_total * itemsize,  # read + write
        ),
    )(x2d)

    if work_total != total:
        return out2d.reshape(-1)[:total].reshape(orig_shape)
    return out2d.reshape(orig_shape)


if __name__ == "__main__":
    key = jax.random.PRNGKey(0)
    k1, k2 = jax.random.split(key)

    # Canonical NCHW input, values in [1, e] so log(x) >= 0 and sqrt is well
    # defined (mirrors the doctest which uses torch.ones).
    x = jax.random.uniform(
        k1, (2, 4, 16, 16), dtype=jnp.float32,
        minval=1.0, maxval=float(jnp.e),
    )
    y = jax.block_until_ready(dace_module_forward(x))
    y_ref = jnp.sqrt(jnp.log(x))
    assert y.shape == x.shape and y.dtype == x.dtype
    assert jnp.allclose(y, y_ref, atol=1e-6, rtol=1e-6)

    # Secondary check: a ragged size (not a multiple of 128) to exercise the
    # alignment-pad path.
    x2 = jax.random.uniform(
        k2, (3, 5, 7, 11), dtype=jnp.float32,
        minval=1.0, maxval=float(jnp.e),
    )
    y2 = jax.block_until_ready(dace_module_forward(x2))
    y2_ref = jnp.sqrt(jnp.log(x2))
    assert y2.shape == x2.shape and y2.dtype == x2.dtype
    assert jnp.allclose(y2, y2_ref, atol=1e-6, rtol=1e-6)

    print("KERNEL_OK")
</pallas_src>

<mosaic_0001>
module attributes {stable_mosaic.version = 11 : i64} {
  func.func @_log_sqrt_kernel(%arg0: i32, %arg1: memref<1x2048xf32, #tpu.memory_space<vmem>>, %arg2: memref<1x2048xf32, #tpu.memory_space<vmem>>) attributes {dimension_semantics = [#tpu.dimension_semantics<parallel>], iteration_bounds = array<i64: 1>, scalar_prefetch = 0 : i64, scratch_operands = 0 : i64, tpu.core_type = #tpu.core_type<tc>, window_params = [{transform_indices = @transform_0, window_bounds = array<i64: 1, 2048>}, {transform_indices = @transform_1, window_bounds = array<i64: 1, 2048>}]} {
    %c0 = arith.constant 0 : index
    %c0_0 = arith.constant 0 : index
    %0 = vector.load %arg1[%c0, %c0_0] : memref<1x2048xf32, #tpu.memory_space<vmem>>, vector<1x2048xf32>
    %1 = math.log %0 : vector<1x2048xf32>
    %2 = math.sqrt %1 : vector<1x2048xf32>
    %c0_1 = arith.constant 0 : index
    %c0_2 = arith.constant 0 : index
    %3 = vector.load %arg2[%c0_1, %c0_2] : memref<1x2048xf32, #tpu.memory_space<vmem>>, vector<1x2048xf32>
    tpu.vector_store %arg2[%c0_1, %c0_2], %2 {strides = array<i32>} : memref<1x2048xf32, #tpu.memory_space<vmem>>, vector<1x2048xf32>,
    return
  }
  func.func @transform_0(%arg0: i32) -> (i32, i32) {
    %c0_i32 = arith.constant 0 : i32
    %c0_i32_0 = arith.constant 0 : i32
    return %arg0, %c0_i32 : i32, i32
  }
  func.func @transform_1(%arg0: i32) -> (i32, i32) {
    %c0_i32 = arith.constant 0 : i32
    %c0_i32_0 = arith.constant 0 : i32
    return %arg0, %c0_i32 : i32, i32
  }
}

</mosaic_0001>

<bundles_post_ra>
// kernel: tpu_custom_call.1
= control target key start
LH: loop header
LB: loop body
LE: loop exit
PB: predicated region body
PF: predicated region fallthrough
CT: control target
= control target key end

     0   :  { %6 = vsyncpa [#allocation3], 0  ;;  %s152_s0 = inlined_call_operand.hbm [shape: f32[1,2048], index: 0, kind: input, shape index: {}]   ;;  %s153_s1 = inlined_call_operand.hbm [shape: f32[1,2048], index: 1, kind: output, shape index: {}]  }
   0x1   :  { %7 = vsyncpa [#allocation4], 0  ;;  %s116_s6 = smov [#allocation2]   ;;  %s68_s10 = scalar_lea.hbm %s152_s0, 256 }
   0x2   :  { %s14_s7 = sshll.u32 %s116_s6, 4  ;;  %p69_p0 = scmp.ne.s32.totalorder %s152_s0, %s68_s10  ;;  %s15_s7 = int_to_ptr.vmem [resolvable:$true] %s14_s7 }
   0x3   :  { %p72_p1 = scmp.lt.u32.totalorder %s68_s10, %s152_s0 }
   0x5   :  { %p74_p2 = pnand %p72_p1, %p69_p0 }
   0x7   :  { %77 = shalt.err (!%p74_p2)
}
   0x8   :  { %s78_s15 = scalar_lea.vmem %s15_s7, 256  ;;  %p83_p4 = scmp.lt.s32.totalorder %s15_s7, %s15_s7 }
   0x9   :  { %p79_p3 = scmp.ne.s32.totalorder %s15_s7, %s78_s15  ;;  %p84_p5 = scmp.lt.s32.totalorder %s78_s15, %s78_s15 }
   0xb   :  { %p85_p6 = por %p84_p5, %p83_p4 }
   0xd   :  { %p86_p7 = pnand %p85_p6, %p79_p3 }
   0xf   :  { %89 = shalt.err (!%p86_p7)
}
  0x10   :  { %17 = dma.hbm_to_vmem [thread:$0]  %s152_s0, 256, %s15_s7, [#allocation3]  }
  0x11   :  { %112 = dma.done.wait [#allocation3], 256  }
  0x12   :  { %113 = vsyncadd [#allocation3], 4294967040  ;;  %v21_v0 = vld [vmem:[#allocation2] sm:$0xff]  ;;  %v22_v1 = vld [vmem:[#allocation2 + $0x8] sm:$0xff]  ;;  %s117_s0 = smov [#allocation5]  }
  0x13   :  { %60 = vlog2.f32 %v21_v0  ;;  %s49_s18 = sshll.u32 %s117_s0, 4  ;;  %s50_s18 = int_to_ptr.vmem [resolvable:$true] %s49_s18 }
  0x14   :  { %62 = vlog2.f32 %v22_v1  ;;  %s90_s19 = scalar_lea.vmem %s50_s18, 256  ;;  %p95_p9 = scmp.lt.s32.totalorder %s50_s18, %s50_s18 }
  0x15   :  { %p91_p8 = scmp.ne.s32.totalorder %s50_s18, %s90_s19  ;;  %p96_p10 = scmp.lt.s32.totalorder %s90_s19, %s90_s19 }
  0x17   :  { %p97_p11 = por %p96_p10, %p95_p9 }
  0x19   :  { %p98_p12 = pnand %p97_p11, %p91_p8 }
  0x1d   :  { %v61_v2 = vpop.eup %60 }
  0x1e   :  { %v63_v3 = vpop.eup %62  ;;  %v24_v4 = vmul.f32 0.6931472, %v61_v2 }
  0x1f   :  { %v26_v5 = vmul.f32 0.6931472, %v63_v3 }
  0x20   :  { %64 = vrsqrt.f32 %v24_v4  ;;  %vm29_vm0 = vcmp.eq.f32.partialorder %v24_v4, inf  ;;  %v32_v7 = vand.u32 2147483648, %v24_v4  ;;  %vm31_vm1 = vcmp.eq.f32.partialorder %v24_v4, 0.0 }
  0x21   :  { %66 = vrsqrt.f32 %v26_v5  ;;  %vm36_vm2 = vcmp.eq.f32.partialorder %v26_v5, inf  ;;  %v39_v10 = vand.u32 2147483648, %v26_v5  ;;  %vm38_vm3 = vcmp.eq.f32.partialorder %v26_v5, 0.0 }
  0x2a   :  { %v65_v6 = vpop.eup %64 }
  0x2b   :  { %v67_v8 = vpop.eup %66  ;;  %v28_v9 = vmul.f32 %v65_v6, %v24_v4 }
  0x2c   :  { %v35_v11 = vmul.f32 %v67_v8, %v26_v5 }
  0x2d   :  { %v30_v12 = vsel %vm29_vm0, %v24_v4, %v28_v9 }
  0x2e   :  { %v33_v13 = vsel %vm31_vm1, %v32_v7, %v30_v12  ;;  %v37_v14 = vsel %vm36_vm2, %v26_v5, %v35_v11 }
  0x2f   :  { %41 = vst [vmem:[#allocation5] sm:$0xff] %v33_v13  ;;  %v40_v15 = vsel %vm38_vm3, %v39_v10, %v37_v14 }
  0x30   :  { %42 = vst [vmem:[#allocation5 + $0x8] sm:$0xff] %v40_v15 }
  0x31   :  { %101 = shalt.err (!%p98_p12)
}
  0x32   :  { %s102_s22 = scalar_lea.hbm %s153_s1, 256 }
  0x33   :  { %p103_p13 = scmp.ne.s32.totalorder %s153_s1, %s102_s22  ;;  %p106_p0 = scmp.lt.u32.totalorder %s102_s22, %s153_s1 }
  0x35   :  { %p108_p1 = pnand %p106_p0, %p103_p13 }
  0x37   :  { %111 = shalt.err (!%p108_p1)
}
  0x38   :  { %52 = dma.vmem_to_hbm [thread:$0]  %s50_s18, 256, %s153_s1, [#allocation4]  }
  0x39   :  { %114 = dma.done.wait [#allocation4], 256  }
  0x3a   :  { %115 = vsyncadd [#allocation4], 4294967040 }
  0x3b   :  { %56 = vsyncpa [#allocation3], 1 }
  0x3c   :  { %57 = vsyncpa [#allocation4], 1 }

</bundles_post_ra>
